<compile_context>
chip_gen: v7x
topology: tpu7x:2x2x1
jax: 0.10.0
libtpu: 0.0.40
codegen_flags: <defaults>
</compile_context>

<pallas_src>
import functools

import jax
import jax.numpy as jnp
from jax.experimental import pallas as pl
from jax.experimental.pallas import tpu as pltpu


# --------------------------------------------------------------------------
# Kernels
# --------------------------------------------------------------------------

def _mxu_prompt_residual_kernel(attn_ref, prompts_ref, x_ref, out_ref):
    # (B, P) @ (P, T) on the MXU with f32 accumulation; residual add and the
    # (B, T) store stay f32 and lane-dense.  The ragged final tile may read
    # garbage lanes past CHW; nothing here reduces over the lane axis and the
    # writeback is masked, so those lanes never reach HBM.
    weighted = jnp.dot(attn_ref[...], prompts_ref[...],
                       preferred_element_type=jnp.float32)
    out_ref[...] = x_ref[...] + weighted


def _vpu_prompt_residual_kernel(attn_ref, prompts_ref, x_ref, out_ref):
    # Sublane-dense small-batch path.
    #   attn_ref    : (B, P) f32 scalars in SMEM
    #   prompts_ref : (P, R, 128) in the streaming dtype (bf16 by default)
    #   x_ref/out   : (B, R, 128) f32
    # out[b] = x[b] + sum_p attn[b, p] * prompts[p]   (pure VPU broadcast-FMA)
    batch = x_ref.shape[0]          # static; < 8 on this path
    n_prompts = prompts_ref.shape[0]  # static; prompt pools are small
    for b in range(batch):
        acc = x_ref[b]
        for p in range(n_prompts):
            acc = acc + attn_ref[b, p] * prompts_ref[p].astype(jnp.float32)
        out_ref[b] = acc


# --------------------------------------------------------------------------
# Tiling helpers
# --------------------------------------------------------------------------

_TARGET_STEP_BYTES = 2 * 1024 * 1024   # ~2 MiB/step amortizes ~0.35us grid-step cost


def _round_up(n, m):
    return ((n + m - 1) // m) * m


def _auto_lane_tile(B, P, CHW, prompt_itemsize):
    # bytes/lane = x read (4B) + out write (4B) + prompts read (itemsize*P)
    per_lane = 8 * B + prompt_itemsize * P
    t = (_TARGET_STEP_BYTES // per_lane // 128) * 128
    cap = max(128, (pl.cdiv(CHW, 4) // 128) * 128)       # keep >= 4 grid steps
    return max(128, min(t, cap, _round_up(CHW, 128)))


def _auto_row_tile(B, P, n_rows, prompt_itemsize):
    per_row = 128 * (8 * B + prompt_itemsize * P)
    r = (_TARGET_STEP_BYTES // per_row // 8) * 8
    cap = max(8, (pl.cdiv(n_rows, 4) // 8) * 8)          # keep >= 4 grid steps
    return max(8, min(r, cap, _round_up(n_rows, 8)))


def _vmem_limit_bytes(step_bytes):
    # Double-buffered in/out blocks (~2x step_bytes) plus slack for sublane
    # padding and semaphores; keep well under v7x's 64 MiB physical VMEM.
    return int(min(max(4 * step_bytes, 16 * 1024 * 1024), 48 * 1024 * 1024))


# --------------------------------------------------------------------------
# Pallas paths
# --------------------------------------------------------------------------

def _mxu_path(attn, prompts_flat, x_flat, lane_tile):
    B, CHW = x_flat.shape
    P = prompts_flat.shape[0]
    cd = prompts_flat.dtype
    itemsize = cd.itemsize

    if lane_tile is None:
        T = _auto_lane_tile(B, P, CHW, itemsize)
    else:
        T = max(128, (int(lane_tile) // 128) * 128)
    if CHW <= 128:
        T = CHW                                   # full-dim block (no 128 rule needed)
    T = min(T, _round_up(CHW, 128))
    num_tiles = pl.cdiv(CHW, T)

    attn_c = attn.astype(cd)                      # tiny (B, P)
    step_bytes = T * (8 * B + itemsize * P)

    grid_spec = pl.GridSpec(
        grid=(num_tiles,),
        in_specs=[
            pl.BlockSpec((B, P), lambda j: (0, 0)),   # attn: grid-invariant, fetched once
            pl.BlockSpec((P, T), lambda j: (0, j)),   # prompts tile (streaming dtype)
            pl.BlockSpec((B, T), lambda j: (0, j)),   # x tile (f32 residual)
        ],
        out_specs=pl.BlockSpec((B, T), lambda j: (0, j)),
    )
    return pl.pallas_call(
        _mxu_prompt_residual_kernel,
        out_shape=jax.ShapeDtypeStruct((B, CHW), jnp.float32),
        grid_spec=grid_spec,
        input_output_aliases={2: 0},              # out re-uses x's HBM buffer
        cost_estimate=pl.CostEstimate(
            flops=2 * B * P * CHW,
            transcendentals=0,
            bytes_accessed=8 * B * CHW + itemsize * P * CHW + itemsize * B * P),
        compiler_params=pltpu.CompilerParams(
            dimension_semantics=("parallel",),
            vmem_limit_bytes=_vmem_limit_bytes(step_bytes)),
    )(attn_c, prompts_flat, x_flat)


def _vpu_path(attn, prompts_flat, x_flat, lane_tile):
    B, CHW = x_flat.shape
    P = prompts_flat.shape[0]
    cd = prompts_flat.dtype
    itemsize = cd.itemsize
    n_rows = CHW // 128                           # CHW % 128 == 0 on this path

    if lane_tile is None:
        R = _auto_row_tile(B, P, n_rows, itemsize)
    else:
        R = max(8, ((int(lane_tile) // 128) // 8) * 8)
    if n_rows <= 8:
        R = n_rows
    R = min(R, _round_up(n_rows, 8))
    num_tiles = pl.cdiv(n_rows, R)

    x3 = x_flat.reshape(B, n_rows, 128)
    prompts3 = prompts_flat.reshape(P, n_rows, 128)
    # Mirror the streaming dtype in the per-batch weights (so numerics match
    # the prompt stream), then keep them f32 for the SMEM scalar reads.
    attn_s = attn.astype(cd).astype(jnp.float32)

    step_bytes = 128 * R * (8 * B + itemsize * P)

    grid_spec = pl.GridSpec(
        grid=(num_tiles,),
        in_specs=[
            pl.BlockSpec(memory_space=pltpu.MemorySpace.SMEM),   # attn scalars
            pl.BlockSpec((P, R, 128), lambda j: (0, j, 0)),      # prompt rows
            pl.BlockSpec((B, R, 128), lambda j: (0, j, 0)),      # x rows (f32)
        ],
        out_specs=pl.BlockSpec((B, R, 128), lambda j: (0, j, 0)),
    )
    out3 = pl.pallas_call(
        _vpu_prompt_residual_kernel,
        out_shape=jax.ShapeDtypeStruct((B, n_rows, 128), jnp.float32),
        grid_spec=grid_spec,
        input_output_aliases={2: 0},              # out re-uses x's HBM buffer
        cost_estimate=pl.CostEstimate(
            flops=2 * B * P * CHW,
            transcendentals=0,
            bytes_accessed=8 * B * CHW + itemsize * P * CHW + 4 * B * P),
        compiler_params=pltpu.CompilerParams(
            dimension_semantics=("parallel",),
            vmem_limit_bytes=_vmem_limit_bytes(step_bytes)),
    )(attn_s, prompts3, x3)
    return out3.reshape(B, CHW)


# --------------------------------------------------------------------------
# Public wrapper
# --------------------------------------------------------------------------

def prepare_prompts(prompts, compute_dtype=jnp.bfloat16):
    """One-time parameter prep (amortized across forwards): flatten the prompt
    stack (P, C, H, W) -> (P, CHW) and cast it to the streaming dtype, so no
    per-call HBM cast pass remains."""
    P = prompts.shape[0]
    return jnp.asarray(prompts, jnp.float32).reshape(P, -1).astype(compute_dtype)


@functools.partial(jax.jit, static_argnames=("lane_tile", "use_mxu"))
def prompt_pool_forward(x, stem_w, fc_w, fc_b, keys, prompts_flat, *,
                        lane_tile=None, use_mxu=None):
    """PromptPool forward.  x: (B, C, H, W) f32 NCHW -> (B, C, H, W) f32.

    `prompts_flat` is the output of `prepare_prompts` (shape (P, CHW), already
    in the streaming dtype — bf16 by default, f32 for exact validation).
    """
    B, C, H, W = x.shape
    CHW = C * H * W
    P = prompts_flat.shape[0]
    if P == 0:
        return x                                   # matches num_prompts == 0 early-out
    assert prompts_flat.shape == (P, CHW)

    # ---- plain-JAX glue: frozen stand-in backbone (torch.no_grad in PyTorch) ----
    # TODO(synk): pretrained ResNet18 forward_features not replicated; a
    # deterministic frozen 1x1-conv stem + ReLU + global-avg-pool stand-in
    # feeds the same classifier-head API.  These matmuls are tiny; HIGHEST
    # precision keeps them reproducible across jits for validation.
    hi = jax.lax.Precision.HIGHEST
    feats = jax.nn.relu(jnp.einsum('bchw,cf->bfhw', x, stem_w, precision=hi))
    pooled = feats.mean(axis=(2, 3))                                 # (B, F)
    x_embed = jnp.dot(pooled, fc_w, precision=hi) + fc_b             # forward_head -> (B, E)
    attn = jnp.dot(x_embed, keys, precision=hi)                      # (B, P) f32

    x_flat = x.reshape(B, CHW)

    if use_mxu is None:
        use_mxu = B >= 8
    use_mxu = bool(use_mxu) or (CHW % 128 != 0)    # VPU layout needs CHW % 128 == 0

    if use_mxu:
        out_flat = _mxu_path(attn, prompts_flat, x_flat, lane_tile)
    else:
        out_flat = _vpu_path(attn, prompts_flat, x_flat, lane_tile)
    return out_flat.reshape(B, C, H, W)


# --------------------------------------------------------------------------
# Pure-JAX reference (mirrors the PyTorch forward)
# --------------------------------------------------------------------------

def _reference_forward(x, stem_w, fc_w, fc_b, keys, prompts, compute_dtype=None):
    """If `compute_dtype` is given, attn/prompts are rounded through it so the
    reference mirrors the kernel's streaming dtype (bf16 path validation)."""
    hi = jax.lax.Precision.HIGHEST
    feats = jax.nn.relu(jnp.einsum('bchw,cf->bfhw', x, stem_w, precision=hi))
    pooled = feats.mean(axis=(2, 3))
    x_embed = jnp.dot(pooled, fc_w, precision=hi) + fc_b
    attn = jnp.dot(x_embed, keys, precision=hi)                      # (B, P)
    if compute_dtype is not None and compute_dtype != jnp.float32:
        attn = attn.astype(compute_dtype).astype(jnp.float32)
        prompts = prompts.astype(compute_dtype).astype(jnp.float32)
    attn5 = attn[:, :, None, None, None]                             # (B, P, 1, 1, 1)
    attn_prompts = (attn5 * prompts[None]).sum(axis=1)               # (B, C, H, W)
    return x + attn_prompts


# --------------------------------------------------------------------------
# Self-test
# --------------------------------------------------------------------------

if __name__ == "__main__":
    B, C, H, W = 2, 4, 16, 16     # input image (NCHW); CHW = 1024
    F = 64                        # stand-in backbone feature dim (resnet18: 512)
    E = 32                        # embed_dim (classifier output)
    P = 4                         # num_prompts

    key = jax.random.PRNGKey(0)
    kx, kstem, kfcw, kfcb, kkeys, kprompts, kx2, kstem2, kprompts2 = \
        jax.random.split(key, 9)

    x = jax.random.normal(kx, (B, C, H, W), dtype=jnp.float32)
    stem_w = jax.random.normal(kstem, (C, F), dtype=jnp.float32) * 0.1
    fc_w = jax.random.normal(kfcw, (F, E), dtype=jnp.float32) * 0.1
    fc_b = jax.random.normal(kfcb, (E,), dtype=jnp.float32) * 0.1
    keys = jax.random.normal(kkeys, (E, P), dtype=jnp.float32)
    prompts = jax.random.normal(kprompts, (P, C, H, W), dtype=jnp.float32)

    ref_f32 = _reference_forward(x, stem_w, fc_w, fc_b, keys, prompts)
    ref_bf16 = _reference_forward(x, stem_w, fc_w, fc_b, keys, prompts,
                                  compute_dtype=jnp.bfloat16)

    # One-time parameter prep (hoisted bf16 cast, per perf review).
    prompts_bf16 = prepare_prompts(prompts, jnp.bfloat16)
    prompts_f32 = prepare_prompts(prompts, jnp.float32)

    # 1) Default config: bf16-streamed prompts, auto path (B=2 -> sublane-dense
    #    VPU path with SMEM attn scalars).  Tight vs. bf16-mirroring reference,
    #    loose vs. pure-f32 reference (bf16 rounding of attn/prompts only).
    out = jax.block_until_ready(
        prompt_pool_forward(x, stem_w, fc_w, fc_b, keys, prompts_bf16))
    assert out.shape == (B, C, H, W)
    assert jnp.allclose(out, ref_bf16, atol=1e-4, rtol=1e-4), "bf16 VPU path mismatch"
    assert jnp.allclose(out, ref_f32, atol=1e-1, rtol=1e-1), "bf16 path far from f32 ref"

    # 2) f32 streaming on the VPU path: exact (no MXU-precision caveats).
    out = jax.block_until_ready(
        prompt_pool_forward(x, stem_w, fc_w, fc_b, keys, prompts_f32))
    assert jnp.allclose(out, ref_f32, atol=1e-4, rtol=1e-4), "f32 VPU path mismatch"

    # 3) Forced MXU path with a ragged lane grid (lane_tile=384 over CHW=1024
    #    -> 3 tiles, last one partially masked): exercises ragged writeback and
    #    the input_output alias on the (B, T) layout.
    out = jax.block_until_ready(
        prompt_pool_forward(x, stem_w, fc_w, fc_b, keys, prompts_bf16,
                            use_mxu=True, lane_tile=384))
    assert jnp.allclose(out, ref_bf16, atol=1e-4, rtol=1e-4), "bf16 MXU path mismatch"
    # f32 on the MXU: accumulation still f32 but the MXU may run reduced-
    # precision passes at default precision, so the tolerance is looser here.
    out = jax.block_until_ready(
        prompt_pool_forward(x, stem_w, fc_w, fc_b, keys, prompts_f32,
                            use_mxu=True, lane_tile=384))
    assert jnp.allclose(out, ref_f32, atol=2e-2, rtol=2e-2), "f32 MXU path mismatch"

    # 4) Second shape exercising a multi-tile, ragged VPU grid:
    #    CHW = 3*32*32 = 3072 -> 24 sublane rows; lane_tile=2048 -> R=16 ->
    #    2 grid steps with a half-valid final block (masked stores).
    C2, H2, W2 = 3, 32, 32
    x2 = jax.random.normal(kx2, (B, C2, H2, W2), dtype=jnp.float32)
    stem_w2 = jax.random.normal(kstem2, (C2, F), dtype=jnp.float32) * 0.1
    prompts2 = jax.random.normal(kprompts2, (P, C2, H2, W2), dtype=jnp.float32)
    ref2 = _reference_forward(x2, stem_w2, fc_w, fc_b, keys, prompts2,
                              compute_dtype=jnp.bfloat16)
    out2 = jax.block_until_ready(
        prompt_pool_forward(x2, stem_w2, fc_w, fc_b, keys,
                            prepare_prompts(prompts2, jnp.bfloat16),
                            lane_tile=2048))
    assert out2.shape == (B, C2, H2, W2)
    assert jnp.allclose(out2, ref2, atol=1e-4, rtol=1e-4), "ragged VPU path mismatch"

    print("KERNEL_OK")
</pallas_src>

<mosaic_0001>
module attributes {stable_mosaic.version = 11 : i64} {
  func.func @_vpu_prompt_residual_kernel(%arg0: i32, %arg1: memref<2x4xf32, #tpu.memory_space<smem>>, %arg2: memref<4x8x128xbf16, #tpu.memory_space<vmem>>, %arg3: memref<2x8x128xf32, #tpu.memory_space<vmem>>, %arg4: memref<2x8x128xf32, #tpu.memory_space<vmem>>) attributes {dimension_semantics = [#tpu.dimension_semantics<parallel>], iteration_bounds = array<i64: 1>, scalar_prefetch = 0 : i64, scratch_operands = 0 : i64, tpu.core_type = #tpu.core_type<tc>, window_params = [{transform_indices = @transform_0, window_bounds = array<i64: 2, 4>}, {transform_indices = @transform_1, window_bounds = array<i64: 4, 8, 128>}, {transform_indices = @transform_2, window_bounds = array<i64: 2, 8, 128>}, {transform_indices = @transform_3, window_bounds = array<i64: 2, 8, 128>}]} {
    %c0 = arith.constant 0 : index
    %c0_0 = arith.constant 0 : index
    %c0_1 = arith.constant 0 : index
    %0 = vector.load %arg3[%c0, %c0_0, %c0_1] : memref<2x8x128xf32, #tpu.memory_space<vmem>>, vector<1x8x128xf32>
    %1 = vector.shape_cast %0 : vector<1x8x128xf32> to vector<8x128xf32>
    %c0_2 = arith.constant 0 : index
    %c0_3 = arith.constant 0 : index
    %2 = memref.load %arg1[%c0_2, %c0_3] : memref<2x4xf32, #tpu.memory_space<smem>>
    %c0_4 = arith.constant 0 : index
    %c0_5 = arith.constant 0 : index
    %c0_6 = arith.constant 0 : index
    %3 = vector.load %arg2[%c0_4, %c0_5, %c0_6] : memref<4x8x128xbf16, #tpu.memory_space<vmem>>, vector<1x8x128xbf16>
    %4 = vector.shape_cast %3 : vector<1x8x128xbf16> to vector<8x128xbf16>
    %5 = arith.extf %4 : vector<8x128xbf16> to vector<8x128xf32>
    %6 = vector.broadcast %2 : f32 to vector<8x128xf32>
    %7 = arith.mulf %6, %5 : vector<8x128xf32>
    %8 = arith.addf %1, %7 : vector<8x128xf32>
    %c0_7 = arith.constant 0 : index
    %c1 = arith.constant 1 : index
    %9 = memref.load %arg1[%c0_7, %c1] : memref<2x4xf32, #tpu.memory_space<smem>>
    %c1_8 = arith.constant 1 : index
    %c0_9 = arith.constant 0 : index
    %c0_10 = arith.constant 0 : index
    %10 = vector.load %arg2[%c1_8, %c0_9, %c0_10] : memref<4x8x128xbf16, #tpu.memory_space<vmem>>, vector<1x8x128xbf16>
    %11 = vector.shape_cast %10 : vector<1x8x128xbf16> to vector<8x128xbf16>
    %12 = arith.extf %11 : vector<8x128xbf16> to vector<8x128xf32>
    %13 = vector.broadcast %9 : f32 to vector<8x128xf32>
    %14 = arith.mulf %13, %12 : vector<8x128xf32>
    %15 = arith.addf %8, %14 : vector<8x128xf32>
    %c0_11 = arith.constant 0 : index
    %c2 = arith.constant 2 : index
    %16 = memref.load %arg1[%c0_11, %c2] : memref<2x4xf32, #tpu.memory_space<smem>>
    %c2_12 = arith.constant 2 : index
    %c0_13 = arith.constant 0 : index
    %c0_14 = arith.constant 0 : index
    %17 = vector.load %arg2[%c2_12, %c0_13, %c0_14] : memref<4x8x128xbf16, #tpu.memory_space<vmem>>, vector<1x8x128xbf16>
    %18 = vector.shape_cast %17 : vector<1x8x128xbf16> to vector<8x128xbf16>
    %19 = arith.extf %18 : vector<8x128xbf16> to vector<8x128xf32>
    %20 = vector.broadcast %16 : f32 to vector<8x128xf32>
    %21 = arith.mulf %20, %19 : vector<8x128xf32>
    %22 = arith.addf %15, %21 : vector<8x128xf32>
    %c0_15 = arith.constant 0 : index
    %c3 = arith.constant 3 : index
    %23 = memref.load %arg1[%c0_15, %c3] : memref<2x4xf32, #tpu.memory_space<smem>>
    %c3_16 = arith.constant 3 : index
    %c0_17 = arith.constant 0 : index
    %c0_18 = arith.constant 0 : index
    %24 = vector.load %arg2[%c3_16, %c0_17, %c0_18] : memref<4x8x128xbf16, #tpu.memory_space<vmem>>, vector<1x8x128xbf16>
    %25 = vector.shape_cast %24 : vector<1x8x128xbf16> to vector<8x128xbf16>
    %26 = arith.extf %25 : vector<8x128xbf16> to vector<8x128xf32>
    %27 = vector.broadcast %23 : f32 to vector<8x128xf32>
    %28 = arith.mulf %27, %26 : vector<8x128xf32>
    %29 = arith.addf %22, %28 : vector<8x128xf32>
    %c0_19 = arith.constant 0 : index
    %c0_20 = arith.constant 0 : index
    %c0_21 = arith.constant 0 : index
    %30 = vector.load %arg4[%c0_19, %c0_20, %c0_21] : memref<2x8x128xf32, #tpu.memory_space<vmem>>, vector<1x8x128xf32>
    %31 = vector.shape_cast %30 : vector<1x8x128xf32> to vector<8x128xf32>
    %32 = vector.shape_cast %29 : vector<8x128xf32> to vector<1x8x128xf32>
    tpu.vector_store %arg4[%c0_19, %c0_20, %c0_21], %32 {strides = array<i32>} : memref<2x8x128xf32, #tpu.memory_space<vmem>>, vector<1x8x128xf32>,
    %c1_22 = arith.constant 1 : index
    %c0_23 = arith.constant 0 : index
    %c0_24 = arith.constant 0 : index
    %33 = vector.load %arg3[%c1_22, %c0_23, %c0_24] : memref<2x8x128xf32, #tpu.memory_space<vmem>>, vector<1x8x128xf32>
    %34 = vector.shape_cast %33 : vector<1x8x128xf32> to vector<8x128xf32>
    %c1_25 = arith.constant 1 : index
    %c0_26 = arith.constant 0 : index
    %35 = memref.load %arg1[%c1_25, %c0_26] : memref<2x4xf32, #tpu.memory_space<smem>>
    %c0_27 = arith.constant 0 : index
    %c0_28 = arith.constant 0 : index
    %c0_29 = arith.constant 0 : index
    %36 = vector.load %arg2[%c0_27, %c0_28, %c0_29] : memref<4x8x128xbf16, #tpu.memory_space<vmem>>, vector<1x8x128xbf16>
    %37 = vector.shape_cast %36 : vector<1x8x128xbf16> to vector<8x128xbf16>
    %38 = arith.extf %37 : vector<8x128xbf16> to vector<8x128xf32>
    %39 = vector.broadcast %35 : f32 to vector<8x128xf32>
    %40 = arith.mulf %39, %38 : vector<8x128xf32>
    %41 = arith.addf %34, %40 : vector<8x128xf32>
    %c1_30 = arith.constant 1 : index
    %c1_31 = arith.constant 1 : index
    %42 = memref.load %arg1[%c1_30, %c1_31] : memref<2x4xf32, #tpu.memory_space<smem>>
    %c1_32 = arith.constant 1 : index
    %c0_33 = arith.constant 0 : index
    %c0_34 = arith.constant 0 : index
    %43 = vector.load %arg2[%c1_32, %c0_33, %c0_34] : memref<4x8x128xbf16, #tpu.memory_space<vmem>>, vector<1x8x128xbf16>
    %44 = vector.shape_cast %43 : vector<1x8x128xbf16> to vector<8x128xbf16>
    %45 = arith.extf %44 : vector<8x128xbf16> to vector<8x128xf32>
    %46 = vector.broadcast %42 : f32 to vector<8x128xf32>
    %47 = arith.mulf %46, %45 : vector<8x128xf32>
    %48 = arith.addf %41, %47 : vector<8x128xf32>
    %c1_35 = arith.constant 1 : index
    %c2_36 = arith.constant 2 : index
    %49 = memref.load %arg1[%c1_35, %c2_36] : memref<2x4xf32, #tpu.memory_space<smem>>
    %c2_37 = arith.constant 2 : index
    %c0_38 = arith.constant 0 : index
    %c0_39 = arith.constant 0 : index
    %50 = vector.load %arg2[%c2_37, %c0_38, %c0_39] : memref<4x8x128xbf16, #tpu.memory_space<vmem>>, vector<1x8x128xbf16>
    %51 = vector.shape_cast %50 : vector<1x8x128xbf16> to vector<8x128xbf16>
    %52 = arith.extf %51 : vector<8x128xbf16> to vector<8x128xf32>
    %53 = vector.broadcast %49 : f32 to vector<8x128xf32>
    %54 = arith.mulf %53, %52 : vector<8x128xf32>
    %55 = arith.addf %48, %54 : vector<8x128xf32>
    %c1_40 = arith.constant 1 : index
    %c3_41 = arith.constant 3 : index
    %56 = memref.load %arg1[%c1_40, %c3_41] : memref<2x4xf32, #tpu.memory_space<smem>>
    %c3_42 = arith.constant 3 : index
    %c0_43 = arith.constant 0 : index
    %c0_44 = arith.constant 0 : index
    %57 = vector.load %arg2[%c3_42, %c0_43, %c0_44] : memref<4x8x128xbf16, #tpu.memory_space<vmem>>, vector<1x8x128xbf16>
    %58 = vector.shape_cast %57 : vector<1x8x128xbf16> to vector<8x128xbf16>
    %59 = arith.extf %58 : vector<8x128xbf16> to vector<8x128xf32>
    %60 = vector.broadcast %56 : f32 to vector<8x128xf32>
    %61 = arith.mulf %60, %59 : vector<8x128xf32>
    %62 = arith.addf %55, %61 : vector<8x128xf32>
    %c1_45 = arith.constant 1 : index
    %c0_46 = arith.constant 0 : index
    %c0_47 = arith.constant 0 : index
    %63 = vector.load %arg4[%c1_45, %c0_46, %c0_47] : memref<2x8x128xf32, #tpu.memory_space<vmem>>, vector<1x8x128xf32>
    %64 = vector.shape_cast %63 : vector<1x8x128xf32> to vector<8x128xf32>
    %65 = vector.shape_cast %62 : vector<8x128xf32> to vector<1x8x128xf32>
    tpu.vector_store %arg4[%c1_45, %c0_46, %c0_47], %65 {strides = array<i32>} : memref<2x8x128xf32, #tpu.memory_space<vmem>>, vector<1x8x128xf32>,
    return
  }
  func.func @transform_0(%arg0: i32) -> (i32, i32) {
    %c0_i32 = arith.constant 0 : i32
    %c0_i32_0 = arith.constant 0 : i32
    %c0_i32_1 = arith.constant 0 : i32
    return %c0_i32, %c0_i32_0 : i32, i32
  }
  func.func @transform_1(%arg0: i32) -> (i32, i32, i32) {
    %c0_i32 = arith.constant 0 : i32
    %c0_i32_0 = arith.constant 0 : i32
    %c0_i32_1 = arith.constant 0 : i32
    return %c0_i32, %arg0, %c0_i32_0 : i32, i32, i32
  }
  func.func @transform_2(%arg0: i32) -> (i32, i32, i32) {
    %c0_i32 = arith.constant 0 : i32
    %c0_i32_0 = arith.constant 0 : i32
    %c0_i32_1 = arith.constant 0 : i32
    return %c0_i32, %arg0, %c0_i32_0 : i32, i32, i32
  }
  func.func @transform_3(%arg0: i32) -> (i32, i32, i32) {
    %c0_i32 = arith.constant 0 : i32
    %c0_i32_0 = arith.constant 0 : i32
    %c0_i32_1 = arith.constant 0 : i32
    return %c0_i32, %arg0, %c0_i32_0 : i32, i32, i32
  }
}

</mosaic_0001>

<bundles_post_ra>
// kernel: prompt_pool_forward.1
= control target key start
LH: loop header
LB: loop body
LE: loop exit
PB: predicated region body
PF: predicated region fallthrough
CT: control target
= control target key end

     0   :  { %8 = vsyncpa [#allocation3], 0  ;;  %s170_s0 = inlined_call_operand.vmem [shape: f32[2,4], index: 0, kind: input, shape index: {}]   ;;  %s171_s1 = inlined_call_operand.vmem [shape: bf16[4,8,128], index: 1, kind: input, shape index: {}]   ;;  %s172_s2 = inlined_call_operand.vmem [shape: f32[2,8,128], index: 2, kind: input, shape index: {}, may-alias: {2,3}]   ;;  %s173_s3 = inlined_call_operand.vmem [shape: f32[2,8,128], index: 3, kind: output, shape index: {}, may-alias: {2,3}]  }
   0x1   :  { %s15_s14 = sshll.u32 %s170_s0, 4  ;;  %s16_s14 = int_to_ptr.vmem [resolvable:$true] %s15_s14 }
   0x2   :  { %s105_s15 = scalar_lea.vmem %s16_s14, 32  ;;  %p110_p1 = scmp.lt.s32.totalorder %s16_s14, %s16_s14 }
   0x3   :  { %p106_p0 = scmp.ne.s32.totalorder %s16_s14, %s105_s15  ;;  %p111_p2 = scmp.lt.s32.totalorder %s105_s15, %s105_s15 }
   0x5   :  { %p112_p3 = por %p111_p2, %p110_p1 }
   0x7   :  { %p113_p4 = pnand %p112_p3, %p106_p0 }
   0x9   :  { %116 = shalt.err (!%p113_p4)
}
   0xa   :  { %s119_s16 = smov [#allocation2]  }
   0xb   :  { %18 = dma.vmem_to_smem %s16_s14, 32, %s119_s16, [#allocation3]  }
   0xc   :  { %117 = dma.done.wait [#allocation3], 32  }
   0xd   :  { %118 = vsyncadd [#allocation3], 4294967264 }
   0xe   :  { %26 = sfence }
   0xf   :  { %s28_s17 = sld [smem:[#allocation2]]  ;;  %v29_v0 = vld [vmem:[%s171_s1] sm:$0xff]   ;;  %s89_s20 = sld [smem:[#allocation2 + $0x1]]  ;;  %v92_v1 = vld [vmem:[%s171_s1 + $0x8] sm:$0xff]  }
  0x10   :  { %s91_s0 = sld [smem:[#allocation2 + $0x2]]  ;;  %s149_s23 = sld [smem:[#allocation2 + $0x3]]  ;;  %v59_v2 = vld [vmem:[%s171_s1] sm:$0xff]   ;;  %v30_v3 = vunpack.c.l.bf16 %v29_v0  ;;  %v37_v4 = vunpack.c.h.bf16 %v29_v0  ;;  %v100_v5 = vld [vmem:[%s171_s1 + $0x8] sm:$0xff]   ;;  %v44_v6 = vunpack.c.l.bf16 %v92_v1  ;;  %v51_v12 = vunpack.c.h.bf16 %v92_v1 }
  0x11   :  { %s96_s24 = sld [smem:[#allocation2 + $0x80]]  ;;  %s97_s27 = sld [smem:[#allocation2 + $0x81]]  ;;  %v60_v7 = vunpack.c.l.bf16 %v59_v2  ;;  %v66_v8 = vunpack.c.h.bf16 %v59_v2  ;;  %v27_v9 = vld [vmem:[%s172_s2] sm:$0xff]  ;;  %v72_v13 = vunpack.c.l.bf16 %v100_v5  ;;  %v78_v17 = vunpack.c.h.bf16 %v100_v5  ;;  %v95_v20 = vld [vmem:[%s172_s2 + $0x8] sm:$0xff] }
  0x12   :  { %s99_s28 = sld [smem:[#allocation2 + $0x82]]  ;;  %s101_s4 = sld [smem:[#allocation2 + $0x83]] }
  0x15   :  { %v31_v10 = vstv %s28_s17  ;;  %v38_v11 = vstv %s89_s20 }
  0x16   :  { %v32_v14 = vmul.f32 %v31_v10, %v30_v3  ;;  %v39_v15 = vmul.f32 %v38_v11, %v37_v4  ;;  %v45_v16 = vstv %s91_s0  ;;  %v52_v19 = vstv %s149_s23 }
  0x17   :  { %v46_v18 = vmul.f32 %v45_v16, %v44_v6  ;;  %v61_v21 = vstv %s96_s24  ;;  %v67_v22 = vstv %s97_s27  ;;  %v53_v29 = vmul.f32 %v52_v19, %v51_v12 }
  0x18   :  { %v33_v23 = vadd.f32 %v32_v14, %v27_v9  ;;  %v62_v24 = vmul.f32 %v61_v21, %v60_v7  ;;  %v68_v25 = vmul.f32 %v67_v22, %v66_v8  ;;  %v73_v26 = vstv %s99_s28 }
  0x19   :  { %v79_v27 = vstv %s101_s4  ;;  %v74_v31 = vmul.f32 %v73_v26, %v72_v13 }
  0x1a   :  { %v40_v28 = vadd.f32 %v39_v15, %v33_v23  ;;  %v63_v30 = vadd.f32 %v95_v20, %v62_v24  ;;  %v80_v34 = vmul.f32 %v79_v27, %v78_v17 }
  0x1c   :  { %v47_v32 = vadd.f32 %v46_v18, %v40_v28  ;;  %v69_v33 = vadd.f32 %v68_v25, %v63_v30 }
  0x1e   :  { %v54_v35 = vadd.f32 %v53_v29, %v47_v32  ;;  %v75_v36 = vadd.f32 %v74_v31, %v69_v33 }
  0x20   :  { %55 = vst [vmem:[%s173_s3] sm:$0xff] %v54_v35  ;;  %v81_v37 = vadd.f32 %v80_v34, %v75_v36 }
  0x22   :  { %103 = vst [vmem:[%s173_s3 + $0x8] sm:$0xff] %v81_v37 }
  0x23   :  { %88 = vsyncpa [#allocation3], 1 }

</bundles_post_ra>
